<compile_context>
chip_gen: v7x
topology: tpu7x:2x2x1
jax: 0.10.0
libtpu: 0.0.40
codegen_flags: <defaults>
</compile_context>

<pallas_src>
import math

import jax
import jax.numpy as jnp
from jax.experimental import pallas as pl
from jax.experimental.pallas import tpu as pltpu


# ----------------------------------------------------------------------------
# Module constants (defaults from CTF.__init__, size overridden to stay small)
# ----------------------------------------------------------------------------
SIZE = 16              # module default is 257; small for the demo
RESOLUTION = 0.8
DOWNSAMPLING = 1
KV = 300
VALUE_NYQUIST = 0.001
CS = 2.7
PHASE_PLATE = 0.0
AMPLITUDE_CONTRAST = 0.1
B_FACTOR = 0

WAVELENGTH = 12.2639 / math.sqrt(KV * 1000.0 + 0.97845 * KV ** 2)
RESOLUTION_EFF = RESOLUTION * DOWNSAMPLING
FREQUENCY = 1.0 / (SIZE * RESOLUTION)

# Scalar coefficients baked in at trace time.
DEFOCUS_COEF = math.pi * WAVELENGTH * 10000.0 * FREQUENCY ** 2
ABBER_COEF = -math.pi / 2.0 * CS * WAVELENGTH ** 3 * 10000000.0 * FREQUENCY ** 4
PHASE_CONST = PHASE_PLATE * math.pi / 2.0
SIN_COEF = (1.0 - AMPLITUDE_CONTRAST ** 2) ** 0.5
COS_COEF = AMPLITUDE_CONTRAST
# sin/cos fusion:  SIN_COEF*sin(x) + COS_COEF*cos(x) = AMP * sin(x + PHASE_SHIFT)
PHASE_SHIFT = math.atan2(COS_COEF, SIN_COEF)
AMP = math.hypot(SIN_COEF, COS_COEF)           # == 1.0 up to fp rounding
if B_FACTOR == 0:
    _DECAY = math.sqrt(-math.log(VALUE_NYQUIST)) * 2.0 * RESOLUTION_EFF
    ENV_COEF = -(FREQUENCY ** 2) * _DECAY ** 2
else:
    ENV_COEF = -(FREQUENCY ** 2) * B_FACTOR / 4.0

# Row layout of the packed constant slab (padded to a full 8-sublane tile).
_ROW_R2, _ROW_R2C, _ROW_R2S, _ROW_BASE, _ROW_ENV = range(5)
_CONST_ROWS = 8


def _make_polar_buffers(size):
    """Plain-JAX glue replicating the registered buffers r2 / angleFrequency."""
    n2 = float(size // 2)
    ax = jnp.arange(-n2, n2 + size % 2, dtype=jnp.float32)
    mx, my = jnp.meshgrid(ax, ax, indexing="ij")   # torch.meshgrid default 'ij'
    r2 = mx ** 2 + my ** 2
    angle_freq = jnp.arctan2(my, mx)
    return r2, angle_freq


def _num_tensorcores():
    """Heuristic TensorCore-per-device count (2 on v7x and v4/v5p megacore)."""
    try:
        kind = jax.devices()[0].device_kind.lower()
    except Exception:  # pragma: no cover - be conservative off-TPU
        return 1
    return 2 if ("v7" in kind or "v4" in kind or "v5p" in kind) else 1


def _choose_blocking(B, C, S_pad, itemsize, num_cores,
                     vmem_target=32 * 1024 * 1024):
    """Pick (bblk, padded B, vmem_limit_bytes) from a real VMEM footprint:
    double-buffered in+out tiles, the packed constant slab, the params slab
    and f32 temporaries, with headroom for compiler scratch."""
    lane_bytes = 128 * 4
    const_bytes = 2 * _CONST_ROWS * S_pad * 4                  # double-buffered
    params_rows = ((B + 16 + 7) // 8) * 8                      # generous upper bound
    params_bytes = 2 * params_rows * lane_bytes
    headroom = 2 * 1024 * 1024
    avail = vmem_target - const_bytes - params_bytes - headroom
    # per batch row in a block: in + out tiles (x2 double buffering) + f32 temps
    per_row = 4 * C * S_pad * itemsize + 2 * S_pad * 4
    bblk = int(max(1, min(B, avail // per_row)))
    if num_cores >= 2 and B >= 2:
        # keep >= 2 grid steps so both TensorCores get balanced halves
        bblk = min(bblk, (B + 1) // 2)
    b_pad = ((B + bblk - 1) // bblk) * bblk
    footprint = (4 * bblk * C * S_pad * itemsize + 2 * bblk * S_pad * 4
                 + const_bytes + params_bytes + headroom)
    vmem_limit = int(min(max(footprint, vmem_target), 56 * 1024 * 1024))
    return bblk, b_pad, vmem_limit


# ----------------------------------------------------------------------------
# Pallas kernel: per-batch CTF evaluation + elementwise multiply (hot path)
# ----------------------------------------------------------------------------
def _make_ctf_kernel(bblk):
    def kernel(params_ref, const_ref, x_ref, o_ref):
        # params_ref: VMEM (B_pad, 3) -> columns [a0, a1, a2] (grid-invariant)
        # const_ref : VMEM (8, S_pad) packed rows [r2, r2c, r2s, base, env]
        # x_ref/o_ref: VMEM (bblk, C, S_pad)
        i = pl.program_id(0)
        r2 = const_ref[_ROW_R2:_ROW_R2 + 1, :]          # (1, S)
        r2c = const_ref[_ROW_R2C:_ROW_R2C + 1, :]
        r2s = const_ref[_ROW_R2S:_ROW_R2S + 1, :]
        base = const_ref[_ROW_BASE:_ROW_BASE + 1, :]
        env = const_ref[_ROW_ENV:_ROW_ENV + 1, :]

        start = i * bblk
        if bblk % 8 == 0:
            start = pl.multiple_of(start, 8)
        p = params_ref[pl.ds(start, bblk), :]           # (bblk, 3)
        a0 = p[:, 0:1]                                  # (bblk, 1)
        a1 = p[:, 1:2]
        a2 = p[:, 2:3]

        # argument = base + defocus contribution (pure VPU FMAs, vectorized
        # over the whole batch block); ONE transcendental per (batch, pixel).
        arg = base + a0 * r2 + a1 * r2c + a2 * r2s      # (bblk, S)
        h = jnp.sin(arg) * env                          # (bblk, S)
        o_ref[...] = (x_ref[...] * h[:, None, :]).astype(o_ref.dtype)
    return kernel


def ctf_forward(x_fourier, defocus_u, defocus_v, angle_astigmatism):
    """x_fourier: [B, C, H, W] f32; params: [B] f32 each. Returns [B, C, H, W]."""
    B, C, H, W = x_fourier.shape
    assert H == W, "square Fourier grid expected"
    S = H * W
    S_pad = ((S + 127) // 128) * 128          # lane-dense last axis

    # --- batch-independent constants packed into one (8, S_pad) slab --------
    r2_2d, ang_2d = _make_polar_buffers(H)
    r2 = r2_2d.reshape(S)
    r2c = (r2_2d * jnp.cos(2.0 * ang_2d)).reshape(S)
    r2s = (r2_2d * jnp.sin(2.0 * ang_2d)).reshape(S)
    base_arg = (PHASE_CONST + PHASE_SHIFT) + ABBER_COEF * r2 * r2
    env = AMP * jnp.exp(ENV_COEF * r2)
    consts = jnp.zeros((_CONST_ROWS, S_pad), jnp.float32)
    consts = consts.at[_ROW_R2, :S].set(r2)
    consts = consts.at[_ROW_R2C, :S].set(r2c)
    consts = consts.at[_ROW_R2S, :S].set(r2s)
    consts = consts.at[_ROW_BASE, :S].set(base_arg)
    consts = consts.at[_ROW_ENV, :S].set(env)

    # --- per-batch scalar coefficients (half-angle identity) ----------------
    # elliptical = 0.5*(du+dv)*r2 + 0.5*(du-dv)*[cos(2aa)*r2*cos(2ang)
    #                                            + sin(2aa)*r2*sin(2ang)]
    du = defocus_u.astype(jnp.float32)
    dv = defocus_v.astype(jnp.float32)
    aa = angle_astigmatism.astype(jnp.float32)
    half_sum = 0.5 * (du + dv)
    half_diff = 0.5 * (du - dv)
    a0 = DEFOCUS_COEF * half_sum
    a1 = DEFOCUS_COEF * half_diff * jnp.cos(2.0 * aa)
    a2 = DEFOCUS_COEF * half_diff * jnp.sin(2.0 * aa)
    params = jnp.stack([a0, a1, a2], axis=-1)          # (B, 3)

    num_cores = _num_tensorcores()
    bblk, b_pad, vmem_limit = _choose_blocking(
        B, C, S_pad, x_fourier.dtype.itemsize, num_cores)

    # --- pad batch / flattened-spatial axes (sliced off afterwards) ---------
    x_flat = x_fourier.reshape(B, C, S)
    if S_pad != S:
        x_flat = jnp.pad(x_flat, ((0, 0), (0, 0), (0, S_pad - S)))
    if b_pad != B:
        x_flat = jnp.pad(x_flat, ((0, b_pad - B), (0, 0), (0, 0)))
        params = jnp.pad(params, ((0, b_pad - B), (0, 0)))

    grid = (b_pad // bblk,)

    out = pl.pallas_call(
        _make_ctf_kernel(bblk),
        out_shape=jax.ShapeDtypeStruct((b_pad, C, S_pad), x_fourier.dtype),
        grid=grid,
        in_specs=[
            pl.BlockSpec((b_pad, 3), lambda i: (0, 0)),             # params (whole, grid-invariant)
            pl.BlockSpec((_CONST_ROWS, S_pad), lambda i: (0, 0)),   # packed constants
            pl.BlockSpec((bblk, C, S_pad), lambda i: (i, 0, 0)),    # x_fourier block
        ],
        out_specs=pl.BlockSpec((bblk, C, S_pad), lambda i: (i, 0, 0)),
        compiler_params=pltpu.CompilerParams(
            dimension_semantics=("parallel",),
            vmem_limit_bytes=vmem_limit),
    )(params, consts, x_flat)

    out = out[:B, :, :S]
    return out.reshape(B, C, H, W)


# ----------------------------------------------------------------------------
# Pure-JAX reference (direct port of CTF.get_ctf / forward) for a sanity check
# ----------------------------------------------------------------------------
def ctf_forward_ref(x_fourier, defocus_u, defocus_v, angle_astigmatism):
    H = x_fourier.shape[-2]
    r2, ang = _make_polar_buffers(H)
    du = defocus_u[:, None, None]
    dv = defocus_v[:, None, None]
    aa = angle_astigmatism[:, None, None]
    elliptical = dv * r2 + (du - dv) * r2 * jnp.cos(ang - aa) ** 2
    argument = PHASE_CONST + ABBER_COEF * r2 ** 2 + DEFOCUS_COEF * elliptical
    h = SIN_COEF * jnp.sin(argument) + COS_COEF * jnp.cos(argument)
    h = h * jnp.exp(ENV_COEF * r2)
    return x_fourier * h[:, None, :, :]


if __name__ == "__main__":
    key = jax.random.PRNGKey(0)
    B, C, H, W = 2, 4, SIZE, SIZE

    kx, ku, kv = jax.random.split(key, 3)
    x_fourier = jax.random.normal(kx, (B, C, H, W), dtype=jnp.float32)
    # defocus sampled like defocus_mean + defocus_stdev * N(0, 1)
    defocus_u = 1.0 + 0.1 * jax.random.normal(ku, (B,), dtype=jnp.float32)
    defocus_v = 1.0 + 0.1 * jax.random.normal(kv, (B,), dtype=jnp.float32)
    # nonzero astigmatism so the half-angle path is exercised
    angle_astig = 0.1 * jnp.ones((B,), dtype=jnp.float32)

    out = ctf_forward(x_fourier, defocus_u, defocus_v, angle_astig)
    out = jax.block_until_ready(out)

    ref = ctf_forward_ref(x_fourier, defocus_u, defocus_v, angle_astig)
    assert out.shape == (B, C, H, W)
    assert jnp.allclose(out, ref, atol=1e-4, rtol=1e-4)

    print("KERNEL_OK")
</pallas_src>

<mosaic_0001>
module attributes {stable_mosaic.version = 11 : i64} {
  func.func @kernel(%arg0: i32, %arg1: memref<2x3xf32, #tpu.memory_space<vmem>>, %arg2: memref<8x256xf32, #tpu.memory_space<vmem>>, %arg3: memref<2x4x256xf32, #tpu.memory_space<vmem>>, %arg4: memref<2x4x256xf32, #tpu.memory_space<vmem>>) attributes {dimension_semantics = [#tpu.dimension_semantics<parallel>], iteration_bounds = array<i64: 1>, scalar_prefetch = 0 : i64, scratch_operands = 0 : i64, tpu.core_type = #tpu.core_type<tc>, window_params = [{pipeline_mode = #tpu.pipeline_mode<synchronous>, transform_indices = @transform_0, window_bounds = array<i64: 2, 3>}, {pipeline_mode = #tpu.pipeline_mode<synchronous>, transform_indices = @transform_1, window_bounds = array<i64: 8, 256>}, {transform_indices = @transform_2, window_bounds = array<i64: 2, 4, 256>}, {transform_indices = @transform_3, window_bounds = array<i64: 2, 4, 256>}]} {
    %c0 = arith.constant 0 : index
    %c0_0 = arith.constant 0 : index
    %0 = vector.load %arg2[%c0, %c0_0] : memref<8x256xf32, #tpu.memory_space<vmem>>, vector<1x256xf32>
    %c1 = arith.constant 1 : index
    %c0_1 = arith.constant 0 : index
    %1 = vector.load %arg2[%c1, %c0_1] : memref<8x256xf32, #tpu.memory_space<vmem>>, vector<1x256xf32>
    %c2 = arith.constant 2 : index
    %c0_2 = arith.constant 0 : index
    %2 = vector.load %arg2[%c2, %c0_2] : memref<8x256xf32, #tpu.memory_space<vmem>>, vector<1x256xf32>
    %c3 = arith.constant 3 : index
    %c0_3 = arith.constant 0 : index
    %3 = vector.load %arg2[%c3, %c0_3] : memref<8x256xf32, #tpu.memory_space<vmem>>, vector<1x256xf32>
    %c4 = arith.constant 4 : index
    %c0_4 = arith.constant 0 : index
    %4 = vector.load %arg2[%c4, %c0_4] : memref<8x256xf32, #tpu.memory_space<vmem>>, vector<1x256xf32>
    %c2_i32 = arith.constant 2 : i32
    %5 = arith.muli %arg0, %c2_i32 : i32
    %6 = arith.index_cast %5 : i32 to index
    %c0_5 = arith.constant 0 : index
    %7 = vector.load %arg1[%6, %c0_5] : memref<2x3xf32, #tpu.memory_space<vmem>>, vector<2x3xf32>
    %8 = vector.extract_strided_slice %7 {offsets = [0, 0], sizes = [2, 1], strides = [1, 1]} : vector<2x3xf32> to vector<2x1xf32>
    %9 = vector.extract_strided_slice %7 {offsets = [0, 1], sizes = [2, 1], strides = [1, 1]} : vector<2x3xf32> to vector<2x1xf32>
    %10 = vector.extract_strided_slice %7 {offsets = [0, 2], sizes = [2, 1], strides = [1, 1]} : vector<2x3xf32> to vector<2x1xf32>
    %11 = vector.broadcast %8 : vector<2x1xf32> to vector<2x256xf32>
    %12 = vector.broadcast %0 : vector<1x256xf32> to vector<2x256xf32>
    %13 = arith.mulf %11, %12 : vector<2x256xf32>
    %14 = vector.broadcast %3 : vector<1x256xf32> to vector<2x256xf32>
    %15 = arith.addf %14, %13 : vector<2x256xf32>
    %16 = vector.broadcast %9 : vector<2x1xf32> to vector<2x256xf32>
    %17 = vector.broadcast %1 : vector<1x256xf32> to vector<2x256xf32>
    %18 = arith.mulf %16, %17 : vector<2x256xf32>
    %19 = arith.addf %15, %18 : vector<2x256xf32>
    %20 = vector.broadcast %10 : vector<2x1xf32> to vector<2x256xf32>
    %21 = vector.broadcast %2 : vector<1x256xf32> to vector<2x256xf32>
    %22 = arith.mulf %20, %21 : vector<2x256xf32>
    %23 = arith.addf %19, %22 : vector<2x256xf32>
    %24 = math.sin %23 : vector<2x256xf32>
    %25 = vector.broadcast %4 : vector<1x256xf32> to vector<2x256xf32>
    %26 = arith.mulf %24, %25 : vector<2x256xf32>
    %c0_6 = arith.constant 0 : index
    %c0_7 = arith.constant 0 : index
    %c0_8 = arith.constant 0 : index
    %27 = vector.load %arg3[%c0_6, %c0_7, %c0_8] : memref<2x4x256xf32, #tpu.memory_space<vmem>>, vector<2x4x256xf32>
    %28 = vector.shape_cast %26 : vector<2x256xf32> to vector<2x1x256xf32>
    %29 = vector.broadcast %28 : vector<2x1x256xf32> to vector<2x4x256xf32>
    %30 = arith.mulf %27, %29 : vector<2x4x256xf32>
    %c0_9 = arith.constant 0 : index
    %c0_10 = arith.constant 0 : index
    %c0_11 = arith.constant 0 : index
    %31 = vector.load %arg4[%c0_9, %c0_10, %c0_11] : memref<2x4x256xf32, #tpu.memory_space<vmem>>, vector<2x4x256xf32>
    tpu.vector_store %arg4[%c0_9, %c0_10, %c0_11], %30 {strides = array<i32>} : memref<2x4x256xf32, #tpu.memory_space<vmem>>, vector<2x4x256xf32>,
    return
  }
  func.func @transform_0(%arg0: i32) -> (i32, i32) {
    %c0_i32 = arith.constant 0 : i32
    %c0_i32_0 = arith.constant 0 : i32
    %c0_i32_1 = arith.constant 0 : i32
    return %c0_i32, %c0_i32_0 : i32, i32
  }
  func.func @transform_1(%arg0: i32) -> (i32, i32) {
    %c0_i32 = arith.constant 0 : i32
    %c0_i32_0 = arith.constant 0 : i32
    %c0_i32_1 = arith.constant 0 : i32
    return %c0_i32, %c0_i32_0 : i32, i32
  }
  func.func @transform_2(%arg0: i32) -> (i32, i32, i32) {
    %c0_i32 = arith.constant 0 : i32
    %c0_i32_0 = arith.constant 0 : i32
    %c0_i32_1 = arith.constant 0 : i32
    return %arg0, %c0_i32, %c0_i32_0 : i32, i32, i32
  }
  func.func @transform_3(%arg0: i32) -> (i32, i32, i32) {
    %c0_i32 = arith.constant 0 : i32
    %c0_i32_0 = arith.constant 0 : i32
    %c0_i32_1 = arith.constant 0 : i32
    return %arg0, %c0_i32, %c0_i32_0 : i32, i32, i32
  }
}

</mosaic_0001>

<bundles_post_ra>
// kernel: tpu_custom_call.1
= control target key start
LH: loop header
LB: loop body
LE: loop exit
PB: predicated region body
PF: predicated region fallthrough
CT: control target
= control target key end

     0   :  { %8 = vsyncpa [#allocation3], 0  ;;  %s736_s0 = inlined_call_operand.hbm [shape: f32[2,3], index: 0, kind: input, shape index: {}]   ;;  %s737_s1 = inlined_call_operand.hbm [shape: f32[8,256], index: 1, kind: input, shape index: {}]   ;;  %s738_s2 = inlined_call_operand.hbm [shape: f32[2,4,256], index: 2, kind: input, shape index: {}]   ;;  %s739_s3 = inlined_call_operand.hbm [shape: f32[2,4,256], index: 3, kind: output, shape index: {}]  }
   0x1   :  { %9 = vsyncpa [#allocation6], 0 }
   0x2   :  { %10 = vsyncpa [#allocation4], 0  ;;  %s561_s12 = smov [#allocation5]   ;;  %s562_s14 = smov [#allocation2]  }
   0x3   :  { %s27_s13 = sshll.u32 %s561_s12, 4  ;;  %s17_s15 = sshll.u32 %s562_s14, 4  ;;  %s28_s13 = int_to_ptr.vmem [resolvable:$true] %s27_s13  ;;  %s18_s15 = int_to_ptr.vmem [resolvable:$true] %s17_s15 }
   0x4   :  { %s467_s18 = scalar_lea.hbm %s737_s1, 256 }
   0x5   :  { %p468_p0 = scmp.ne.s32.totalorder %s737_s1, %s467_s18  ;;  %p471_p1 = scmp.lt.u32.totalorder %s467_s18, %s737_s1 }
   0x7   :  { %p473_p2 = pnand %p471_p1, %p468_p0 }
   0x9   :  { %476 = shalt.err (!%p473_p2)
}
   0xa   :  { %s477_s23 = scalar_lea.vmem %s28_s13, 256  ;;  %p482_p4 = scmp.lt.s32.totalorder %s28_s13, %s28_s13 }
   0xb   :  { %p478_p3 = scmp.ne.s32.totalorder %s28_s13, %s477_s23  ;;  %p483_p5 = scmp.lt.s32.totalorder %s477_s23, %s477_s23 }
   0xd   :  { %p484_p6 = por %p483_p5, %p482_p4 }
   0xf   :  { %p485_p7 = pnand %p484_p6, %p478_p3 }
  0x11   :  { %488 = shalt.err (!%p485_p7)
}
  0x12   :  { %30 = dma.hbm_to_vmem [thread:$0]  %s737_s1, 256, %s28_s13, [#allocation6]  }
  0x13   :  { %s489_s28 = scalar_lea.hbm %s736_s0, 32 }
  0x14   :  { %p490_p8 = scmp.ne.s32.totalorder %s736_s0, %s489_s28  ;;  %p493_p9 = scmp.lt.u32.totalorder %s489_s28, %s736_s0 }
  0x16   :  { %p495_p10 = pnand %p493_p9, %p490_p8 }
  0x18   :  { %498 = shalt.err (!%p495_p10)
}
  0x19   :  { %s499_s6 = scalar_lea.vmem %s18_s15, 32  ;;  %p504_p12 = scmp.lt.s32.totalorder %s18_s15, %s18_s15 }
  0x1a   :  { %p500_p11 = scmp.ne.s32.totalorder %s18_s15, %s499_s6  ;;  %p505_p13 = scmp.lt.s32.totalorder %s499_s6, %s499_s6 }
  0x1c   :  { %p506_p0 = por %p505_p13, %p504_p12 }
  0x1e   :  { %p507_p1 = pnand %p506_p0, %p500_p11 }
  0x20   :  { %510 = shalt.err (!%p507_p1)
}
  0x21   :  { %20 = dma.hbm_to_vmem [thread:$0]  %s736_s0, 32, %s18_s15, [#allocation3]  }
  0x22   :  { %s563_s8 = smov [#allocation7]   ;;  %s511_s12 = scalar_lea.hbm %s738_s2, 256 }
  0x23   :  { %s36_s9 = sshll.u32 %s563_s8, 4  ;;  %p512_p2 = scmp.ne.s32.totalorder %s738_s2, %s511_s12  ;;  %s37_s9 = int_to_ptr.vmem [resolvable:$true] %s36_s9 }
  0x24   :  { %p515_p3 = scmp.lt.u32.totalorder %s511_s12, %s738_s2 }
  0x26   :  { %p517_p4 = pnand %p515_p3, %p512_p2 }
  0x28   :  { %520 = shalt.err (!%p517_p4)
}
  0x29   :  { %s521_s18 = scalar_lea.vmem %s37_s9, 256  ;;  %p526_p6 = scmp.lt.s32.totalorder %s37_s9, %s37_s9 }
  0x2a   :  { %p522_p5 = scmp.ne.s32.totalorder %s37_s9, %s521_s18  ;;  %p527_p7 = scmp.lt.s32.totalorder %s521_s18, %s521_s18 }
  0x2c   :  { %p528_p8 = por %p527_p7, %p526_p6 }
  0x2e   :  { %p529_p9 = pnand %p528_p8, %p522_p5 }
  0x30   :  { %532 = shalt.err (!%p529_p9)
}
  0x31   :  { %s564_s0 = smov 128   ;;  %s565_s15 = smov 8  }
  0x32   :  { %42 = dma.hbm_to_vmem [thread:$0]  %s738_s2, 256, %s37_s9, [#allocation6], %s564_s0, %s564_s0, %s565_s15  }
  0x33   :  { %555 = dma.done.wait [#allocation3], 32  }
  0x34   :  { %556 = vsyncadd [#allocation3], 4294967264 }
  0x35   :  { %557 = dma.done.wait [#allocation6], 512  }
  0x36   :  { %558 = vsyncadd [#allocation6], 4294966784  ;;  %v566_v0 = vmov 0   ;;  %v567_v1 = vmov 2   ;;  %v63_v2 = vld [vmem:[#allocation2] sm:$0x3]  ;;  %v70_v4 = vlaneseq }
  0x37   :  { %455 = vset.pattern.permute.xlu0 %v566_v0  ;;  %457 = vset.pattern.permute.xlu1 %v567_v1  ;;  %v568_v3 = vmov 1   ;;  %v52_v8 = vld [vmem:[#allocation5] ss:$8 sm:$0x3]  ;;  %v569_v55 = vmov 683565275  }
  0x38   :  { %66 = vperm.xlu0 %455, %v63_v2   ;;  %115 = vperm.xlu1 %457, %v63_v2   ;;  %v636_v5 = vshrl.u32 %v70_v4, 7  ;;  %v58_v9 = vld [vmem:[#allocation5 + $0x3] ss:$8 sm:$0x3]  ;;  %v570_v59 = vmov 2475754826  }
  0x39   :  { %v56_v12 = vld [vmem:[#allocation5 + $0x2] ss:$8 sm:$0x3]  ;;  %v54_v13 = vld [vmem:[#allocation5 + $0x1] ss:$8 sm:$0x3] }
  0x3a   :  { %v639_v6 = vsub.s32 0, %v636_v5  ;;  %v642_v7 = vsub.s32 1, %v636_v5  ;;  %v571_v61 = vmov 2131351028   ;;  %v572_v63 = vmov 2102212464  }
  0x3b   :  { %s576_s2 = smov [#allocation8]  }
  0x3c   :  { %456 = vset.pattern.permute.xlu0 %v568_v3  ;;  %v73_v10 = vrot.slane %v52_v8, %v639_v6  ;;  %v77_v11 = vrot.slane %v52_v8, %v642_v7  ;;  %v86_v15 = vrot.slane %v58_v9, %v639_v6  ;;  %v90_v16 = vrot.slane %v58_v9, %v642_v7  ;;  %s410_s21 = sshll.u32 %s576_s2, 4  ;;  %s411_s21 = int_to_ptr.vmem [resolvable:$true] %s410_s21 }
  0x3d   :  { %96 = vperm.xlu0 %456, %v63_v2   ;;  %v122_v17 = vrot.slane %v56_v12, %v639_v6  ;;  %v126_v18 = vrot.slane %v56_v12, %v642_v7  ;;  %v103_v21 = vrot.slane %v54_v13, %v639_v6  ;;  %v107_v22 = vrot.slane %v54_v13, %v642_v7  ;;  %s533_s22 = scalar_lea.vmem %s411_s21, 256  ;;  %p538_p11 = scmp.lt.s32.totalorder %s411_s21, %s411_s21 }
  0x3e   :  { %p534_p10 = scmp.ne.s32.totalorder %s411_s21, %s533_s22  ;;  %p539_p12 = scmp.lt.s32.totalorder %s533_s22, %s533_s22 }
  0x40   :  { %p540_p13 = por %p539_p12, %p538_p11 }
  0x41   :  { %458 = vset.pattern.permute.xlu0 %v567_v1  ;;  %v573_v1 = vmov 920167782  }
  0x42   :  { %p541_p0 = pnand %p540_p13, %p534_p10 }
  0xb7   :  { %v67_v14 = vpop.permute.xlu0 %66  ;;  %v116_v23 = vpop.permute.xlu1 %115 }
  0xb8   :  { %v80_v19 = vmul.f32 %v73_v10, %v67_v14  ;;  %v81_v20 = vmul.f32 %v77_v11, %v67_v14  ;;  %v129_v25 = vmul.f32 %v122_v17, %v116_v23  ;;  %v130_v26 = vmul.f32 %v126_v18, %v116_v23 }
  0xb9   :  { %v574_v11 = vmov 1326507024  }
  0xba   :  { %v93_v27 = vadd.f32 %v86_v15, %v80_v19  ;;  %v94_v28 = vadd.f32 %v90_v16, %v81_v20 }
  0xbc   :  { %v97_v24 = vpop.permute.xlu0 %96 }
  0xbd   :  { %v110_v29 = vmul.f32 %v103_v21, %v97_v24  ;;  %v111_v30 = vmul.f32 %v107_v22, %v97_v24 }
  0xbf   :  { %v112_v31 = vadd.f32 %v110_v29, %v93_v27  ;;  %v113_v32 = vadd.f32 %v111_v30, %v94_v28 }
  0xc1   :  { %v652_v33 = vadd.f32 %v129_v25, %v112_v31  ;;  %v654_v34 = vadd.f32 %v130_v26, %v113_v32 }
  0xc3   :  { %v133_v35 = vand.u32 2147483647, %v652_v33  ;;  %v136_v36 = vand.u32 2139095040, %v652_v33  ;;  %v240_v37 = vand.u32 2139095040, %v654_v34  ;;  %v237_v40 = vand.u32 2147483647, %v654_v34 }
  0xc4   :  { %vm135_vm14 = vcmp.lt.s32.totalorder %v652_v33, 0 }
  0xc5   :  { %v137_v38 = vshrl.u32 %v136_v36, 23  ;;  %v140_v39 = vand.u32 8388607, %v133_v35  ;;  %v241_v41 = vshrl.u32 %v240_v37, 23  ;;  %v664_v46 = vand.u32 8388607, %v237_v40 }
  0xc6   :  { %vm134_vm15 = vcmp.le.f32.partialorder %v133_v35, 0.7853982 }
  0xc7   :  { %v423_v42 = vadd.s32 4294967169, %v137_v38  ;;  %v427_v43 = vadd.s32 4294967169, %v241_v41  ;;  %v141_v45 = vor.u32 8388608, %v140_v39  ;;  %v245_v53 = vor.u32 8388608, %v664_v46 }
  0xc9   :  { %v143_v44 = vadd.s32 1, %v423_v42  ;;  %v247_v47 = vadd.s32 1, %v427_v43  ;;  %v666_v52 = vshll.u32 %v141_v45, 8 }
  0xcb   :  { %vm144_vm0 = vcmp.gt.s32.totalorder %v143_v44, 0  ;;  %vm248_vm1 = vcmp.gt.s32.totalorder %v247_v47, 0 }
  0xcc   :  { %v145_v48 = vsel %vm144_vm0, %v143_v44, 0  ;;  %v249_v51 = vsel %vm248_vm1, %v247_v47, 0  ;;  %vm239_vm0 = vcmp.lt.s32.totalorder %v654_v34, 0  ;;  %vm238_vm1 = vcmp.le.f32.partialorder %v237_v40, 0.7853982 }
  0xcd   :  { %v146_v49 = vshrl.u32 %v145_v48, 5  ;;  %v147_v50 = vand.u32 31, %v145_v48  ;;  %v669_v57 = vshrl.u32 %v249_v51, 5  ;;  %v251_v58 = vand.u32 31, %v249_v51 }
  0xce   :  { %v285_v51 = vshll.u32 %v245_v53, 8 }
  0xcf   :  { %v148_v54 = vsub.s32 32, %v147_v50  ;;  %v150_v56 = vshll.u32 %v569_v55, %v147_v50  ;;  %v153_v60 = vshll.u32 %v570_v59, %v147_v50  ;;  %v156_v62 = vshll.u32 %v571_v61, %v147_v50 }
  0xd0   :  { %v159_v0 = vshll.u32 %v572_v63, %v147_v50  ;;  %v162_v2 = vshll.u32 %v573_v1, %v147_v50  ;;  %vm165_vm2 = vcmp.lt.s32.totalorder %v146_v49, 1  ;;  %vm166_vm3 = vcmp.lt.s32.totalorder %v146_v49, 2 }
  0xd1   :  { %v151_v3 = vshrl.u32 %v570_v59, %v148_v54  ;;  %v154_v4 = vshrl.u32 %v571_v61, %v148_v54  ;;  %v157_v8 = vshrl.u32 %v572_v63, %v148_v54  ;;  %v149_v9 = vshrl.u32 %v569_v55, %v148_v54 }
  0xd2   :  { %v160_v10 = vshrl.u32 %v573_v1, %v148_v54  ;;  %v163_v12 = vshrl.u32 %v574_v11, %v148_v54  ;;  %v252_v16 = vsub.s32 32, %v251_v58  ;;  %vm167_vm4 = vcmp.lt.s32.totalorder %v146_v49, 3 }
  0xd3   :  { %v152_v13 = vor.u32 %v151_v3, %v150_v56  ;;  %v155_v14 = vor.u32 %v154_v4, %v153_v60  ;;  %v158_v15 = vor.u32 %v157_v8, %v156_v62  ;;  %vm168_vm5 = vcmp.lt.s32.totalorder %v146_v49, 4 }
  0xd4   :  { %v161_v17 = vor.u32 %v160_v10, %v159_v0  ;;  %v164_v18 = vor.u32 %v163_v12, %v162_v2  ;;  %v254_v26 = vshll.u32 %v569_v55, %v251_v58  ;;  %v255_v29 = vshrl.u32 %v570_v59, %v252_v16 }
  0xd5   :  { %v169_v19 = vsel %vm165_vm2, %v149_v9, %v152_v13  ;;  %v170_v20 = vsel %vm168_vm5, %v158_v15, 2102212464  ;;  %v173_v21 = vsel %vm165_vm2, %v152_v13, %v155_v14  ;;  %v177_v22 = vsel %vm165_vm2, %v155_v14, %v158_v15 }
  0xd6   :  { %v171_v23 = vsel %vm167_vm4, %v155_v14, %v170_v20  ;;  %v174_v24 = vsel %vm168_vm5, %v161_v17, 920167782  ;;  %v178_v25 = vsel %vm168_vm5, %v164_v18, 1326507024  ;;  %v257_v30 = vshll.u32 %v570_v59, %v251_v58 }
  0xd7   :  { %v175_v27 = vsel %vm167_vm4, %v158_v15, %v174_v24  ;;  %v179_v28 = vsel %vm167_vm4, %v161_v17, %v178_v25  ;;  %v172_v31 = vsel %vm166_vm3, %v169_v19, %v171_v23  ;;  %v258_v37 = vshrl.u32 %v571_v61, %v252_v16 }
  0xd8   :  { %v176_v32 = vsel %vm166_vm3, %v173_v21, %v175_v27  ;;  %v180_v36 = vsel %vm166_vm3, %v177_v22, %v179_v28  ;;  %v256_v43 = vor.u32 %v255_v29, %v254_v26  ;;  %v260_v45 = vshll.u32 %v571_v61, %v251_v58 }
  0xd9   :  { %v678_v38 = vmul.u32.u64.low %v666_v52, %v180_v36  ;;  %v679_v39 = vmul.u32.u64.high %v666_v52, %v180_v36, %v678_v38  ;;  %v682_v41 = vmul.u32.u64.low %v666_v52, %v176_v32  ;;  %v683_v42 = vmul.u32.u64.high %v666_v52, %v176_v32, %v682_v41 }
  0xda   :  { %v259_v44 = vor.u32 %v258_v37, %v257_v30  ;;  %v261_v46 = vshrl.u32 %v572_v63, %v252_v16  ;;  %v263_v47 = vshll.u32 %v572_v63, %v251_v58  ;;  %v264_v48 = vshrl.u32 %v573_v1, %v252_v16 }
  0xdb   :  { %v267_v50 = vshrl.u32 %v574_v11, %v252_v16  ;;  %v188_v49 = vmul.u32 %v666_v52, %v172_v31  ;;  %v253_v54 = vshrl.u32 %v569_v55, %v252_v16  ;;  %v266_v59 = vshll.u32 %v573_v1, %v251_v58 }
  0xdc   :  { %v262_v56 = vor.u32 %v261_v46, %v260_v45  ;;  %vm190_vm6 = vc.u32 %v679_v39, %v682_v41  ;;  %v191_v60 = vadd.s32 1, %v683_v42  ;;  %v265_v62 = vor.u32 %v264_v48, %v263_v47 }
  0xdd   :  { %vm269_vm7 = vcmp.lt.s32.totalorder %v669_v57, 1  ;;  %v268_v0 = vor.u32 %v267_v50, %v266_v59  ;;  %vm271_vm8 = vcmp.lt.s32.totalorder %v669_v57, 3  ;;  %vm272_vm9 = vcmp.lt.s32.totalorder %v669_v57, 4 }
  0xde   :  { %v277_v61 = vsel %vm269_vm7, %v256_v43, %v259_v44  ;;  %v192_v53 = vsel %vm190_vm6, %v191_v60, %v683_v42  ;;  %v274_v63 = vsel %vm272_vm9, %v262_v56, 2102212464  ;;  %v278_v52 = vsel %vm272_vm9, %v265_v62, 920167782 }
  0xdf   :  { %v281_v55 = vsel %vm269_vm7, %v259_v44, %v262_v56  ;;  %v193_v2 = vadd.s32 %v192_v53, %v188_v49  ;;  %vm270_vm10 = vcmp.lt.s32.totalorder %v669_v57, 2  ;;  %v279_v58 = vsel %vm271_vm8, %v262_v56, %v278_v52 }
  0xe0   :  { %v282_v1 = vsel %vm272_vm9, %v268_v0, 1326507024  ;;  %v273_v3 = vsel %vm269_vm7, %v253_v54, %v256_v43  ;;  %v275_v4 = vsel %vm271_vm8, %v259_v44, %v274_v63  ;;  %v280_v8 = vsel %vm270_vm10, %v277_v61, %v279_v58 }
  0xe1   :  { %v283_v9 = vsel %vm271_vm8, %v265_v62, %v282_v1  ;;  %v194_v10 = vadd.s32 536870912, %v193_v2  ;;  %v693_v12 = vmul.u32.u64.low %v285_v51, %v280_v8  ;;  %v694_v13 = vmul.u32.u64.high %v285_v51, %v280_v8, %v693_v12 }
  0xe2   :  { %v284_v11 = vsel %vm270_vm10, %v281_v55, %v283_v9  ;;  %v276_v17 = vsel %vm270_vm10, %v273_v3, %v275_v4  ;;  %v189_v36 = vadd.s32 %v682_v41, %v679_v39  ;;  %vm225_vm5 = vweird.f32 %v652_v33 }
  0xe3   :  { %v696_v14 = vmul.u32.u64.low %v285_v51, %v284_v11  ;;  %v697_v15 = vmul.u32.u64.high %v285_v51, %v284_v11, %v696_v14  ;;  %v195_v16 = vshrl.u32 %v194_v10, 30  ;;  %v295_v19 = vadd.s32 1, %v694_v13 }
  0xe4   :  { %v292_v57 = vmul.u32 %v285_v51, %v276_v17  ;;  %vm329_vm9 = vweird.f32 %v654_v34 }
  0xe5   :  { %v196_v18 = vshll.u32 %v195_v16, 30  ;;  %vm294_vm11 = vc.u32 %v697_v15, %v693_v12  ;;  %v293_v59 = vadd.s32 %v693_v12, %v697_v15  ;;  %v219_v63 = vsub.s32 4, %v195_v16 }
  0xe6   :  { %v296_v21 = vsel %vm294_vm11, %v295_v19, %v694_v13 }
  0xe7   :  { %v197_v20 = vsub.s32 %v193_v2, %v196_v18  ;;  %v297_v22 = vadd.s32 %v296_v21, %v292_v57  ;;  %v220_v3 = vsel %vm135_vm14, %v219_v63, %v195_v16 }
  0xe8   :  { %v222_v9 = vsel %vm134_vm15, 0, %v220_v3 }
  0xe9   :  { %v199_v23 = vsub.s32 0, %v197_v20  ;;  %v298_v24 = vadd.s32 536870912, %v297_v22  ;;  %v226_v13 = vadd.s32 3, %v222_v9 }
  0xeb   :  { %v424_v25 = vmin.u32 %v199_v23, %v197_v20  ;;  %v299_v26 = vshrl.u32 %v298_v24, 30  ;;  %v227_v17 = vand.u32 3, %v226_v13  ;;  %v60_v24 = vld [vmem:[#allocation5 + $0x4] ss:$8 sm:$0x3] }
  0xed   :  { %v201_v27 = vclz %v424_v25  ;;  %v300_v28 = vshll.u32 %v299_v26, 30  ;;  %v323_v11 = vsub.s32 4, %v299_v26  ;;  %vm229_vm2 = vcmp.eq.s32.totalorder %v227_v17, 0 }
  0xee   :  { %vm232_vm3 = vcmp.eq.s32.totalorder %v227_v17, 2  ;;  %vm228_vm4 = vcmp.lt.s32.totalorder %v227_v17, 2 }
  0xef   :  { %v425_v29 = vadd.s32 4294967294, %v201_v27  ;;  %v301_v30 = vsub.s32 %v297_v22, %v300_v28  ;;  %v324_v14 = vsel %vm239_vm0, %v323_v11, %v299_v26  ;;  %v575_v26 = vmov 1966171168  }
  0xf0   :  { %v326_v18 = vsel %vm238_vm1, 0, %v324_v14  ;;  %v360_v27 = vunpack.c.l.s4 %v575_v26 }
  0xf1   :  { %vm426_vm12 = vcmp.lt.s32.totalorder %v425_v29, 0  ;;  %v303_v32 = vsub.s32 0, %v301_v30  ;;  %v330_v21 = vadd.s32 3, %v326_v18 }
  0xf2   :  { %v204_v31 = vsel %vm426_vm12, 0, %v425_v29 }
  0xf3   :  { %v205_v37 = vsub.s32 32, %v204_v31  ;;  %v209_v38 = vsub.s32 4294967266, %v204_v31  ;;  %v428_v42 = vmin.u32 %v303_v32, %v301_v30  ;;  %v206_v43 = vshll.u32 %v197_v20, %v204_v31 }
  0xf4   :  { %v331_v40 = vand.u32 3, %v330_v21  ;;  %v345_v31 = vrot.slane %v60_v24, %v639_v6 }
  0xf5   :  { %v207_v44 = vshrl.u32 %v189_v36, %v205_v37  ;;  %v210_v45 = vadd.s32 127, %v209_v38  ;;  %v305_v46 = vclz %v428_v42  ;;  %v349_v38 = vrot.slane %v60_v24, %v642_v7 }
  0xf6   :  { %vm336_vm6 = vcmp.eq.s32.totalorder %v331_v40, 2  ;;  %vm333_vm7 = vcmp.eq.s32.totalorder %v331_v40, 0  ;;  %v361_v42 = vunpack.c.0.s8 %v360_v27  ;;  %vm332_vm8 = vcmp.lt.s32.totalorder %v331_v40, 2 }
  0xf7   :  { %v208_v47 = vor.u32 %v207_v44, %v206_v43  ;;  %v211_v48 = vshll.u32 %v210_v45, 23  ;;  %v429_v50 = vadd.s32 4294967294, %v305_v46 }
  0xf9   :  { %v212_v51 = vor.u32 4788187, %v211_v48  ;;  %vm430_vm13 = vcmp.lt.s32.totalorder %v429_v50, 0  ;;  %v215_v54 = vcvt.s32.f32 %v208_v47 }
  0xfa   :  { %v308_v56 = vsel %vm430_vm13, 0, %v429_v50 }
  0xfb   :  { %v213_v49 = vand.u32 2147483647, %v212_v51  ;;  %v309_v60 = vsub.s32 32, %v308_v56  ;;  %v313_v62 = vsub.s32 4294967266, %v308_v56  ;;  %v310_v41 = vshll.u32 %v301_v30, %v308_v56 }
  0xfd   :  { %v216_v39 = vmul.f32 %v215_v54, %v213_v49  ;;  %v311_v0 = vshrl.u32 %v293_v59, %v309_v60  ;;  %v314_v61 = vadd.s32 127, %v313_v62  ;;  %v354_v60 = vld [vmem:[#allocation7] sm:$0xff] }
  0xff   :  { %v217_v53 = vxor.u32 2147483648, %v216_v39  ;;  %v312_v52 = vor.u32 %v311_v0, %v310_v41  ;;  %v315_v55 = vshll.u32 %v314_v61, 23  ;;  %v355_v41 = vld [vmem:[#allocation7 + $0x8] sm:$0xff] }
 0x101   :  { %v218_v2 = vsel %vm135_vm14, %v217_v53, %v216_v39  ;;  %v316_v1 = vor.u32 4788187, %v315_v55  ;;  %v319_v8 = vcvt.s32.f32 %v312_v52 }
 0x102   :  { %v221_v58 = vsel %vm134_vm15, %v652_v33, %v218_v2  ;;  %v364_v33 = vsub.s32 %v361_v42, %v636_v5 }
 0x103   :  { %459 = vcosq.f32 %v221_v58  ;;  %v317_v4 = vand.u32 2147483647, %v316_v1 }
 0x104   :  { %461 = vsinq.f32 %v221_v58 }
 0x105   :  { %v320_v10 = vmul.f32 %v319_v8, %v317_v4 }
 0x107   :  { %v321_v12 = vxor.u32 2147483648, %v320_v10 }
 0x109   :  { %v322_v35 = vsel %vm239_vm0, %v321_v12, %v320_v10 }
 0x10a   :  { %v325_v15 = vsel %vm238_vm1, %v654_v34, %v322_v35 }
 0x10b   :  { %463 = vcosq.f32 %v325_v15 }
 0x10c   :  { %465 = vsinq.f32 %v325_v15 }
 0x10d   :  { %v460_v16 = vpop.eup %459 }
 0x10e   :  { %v462_v19 = vpop.eup %461  ;;  %v233_v57 = vxor.u32 2147483648, %v460_v16 }
 0x10f   :  { %v230_v20 = vxor.u32 2147483648, %v462_v19 }
 0x110   :  { %v234_v23 = vsel %vm232_vm3, %v233_v57, %v462_v19 }
 0x111   :  { %v231_v22 = vsel %vm229_vm2, %v460_v16, %v230_v20 }
 0x112   :  { %v235_v25 = vsel %vm228_vm4, %v231_v22, %v234_v23 }
 0x113   :  { %v236_v32 = vsel %vm225_vm5, nan, %v235_v25 }
 0x114   :  { %v352_v45 = vmul.f32 %v345_v31, %v236_v32 }
 0x115   :  { %v464_v28 = vpop.eup %463 }
 0x116   :  { %v466_v29 = vpop.eup %465  ;;  %v337_v30 = vxor.u32 2147483648, %v464_v28 }
 0x117   :  { %v334_v36 = vxor.u32 2147483648, %v466_v29 }
 0x118   :  { %v338_v37 = vsel %vm336_vm6, %v337_v30, %v466_v29 }
 0x119   :  { %v335_v43 = vsel %vm333_vm7, %v464_v28, %v334_v36 }
 0x11a   :  { %v339_v44 = vsel %vm332_vm8, %v335_v43, %v338_v37 }
 0x11b   :  { %v340_v46 = vsel %vm329_vm9, nan, %v339_v44 }
 0x11c   :  { %v353_v47 = vmul.f32 %v349_v38, %v340_v46 }
 0x11e   :  { %v358_v48 = vcombine.low %v352_v45, %v353_v47 }
 0x120   :  { %v365_v50 = vrot.slane %v358_v48, %v364_v33 }
 0x122   :  { %v366_v51 = vcombine.high %v365_v50, %v365_v50  ;;  %v373_v49 = vrot.slane %v365_v50, %v364_v33 }
 0x124   :  { %v380_v54 = vrot.slane %v366_v51, %v364_v33  ;;  %v384_v56 = vrot.slane %v373_v49, %v639_v6  ;;  %v388_v59 = vrot.slane %v373_v49, %v642_v7 }
 0x126   :  { %v392_v62 = vrot.slane %v380_v54, %v639_v6  ;;  %v396_v34 = vrot.slane %v380_v54, %v642_v7  ;;  %v397_v39 = vcombine.low %v384_v56, %v388_v59 }
 0x128   :  { %v398_v0 = vcombine.low %v392_v62, %v396_v34  ;;  %v401_v5 = vmul.f32 %v397_v39, %v354_v60 }
 0x12a   :  { %v402_v61 = vmul.f32 %v398_v0, %v355_v41  ;;  %403 = vst [vmem:[#allocation8] sm:$0xff] %v401_v5 }
 0x12c   :  { %404 = vst [vmem:[#allocation8 + $0x8] sm:$0xff] %v402_v61 }
 0x12d   :  { %544 = shalt.err (!%p541_p0)
}
 0x12e   :  { %s545_s25 = scalar_lea.hbm %s739_s3, 256 }
 0x12f   :  { %p546_p1 = scmp.ne.s32.totalorder %s739_s3, %s545_s25  ;;  %p549_p2 = scmp.lt.u32.totalorder %s545_s25, %s739_s3 }
 0x131   :  { %p551_p3 = pnand %p549_p2, %p546_p1 }
 0x133   :  { %554 = shalt.err (!%p551_p3)
}
 0x134   :  { %416 = dma.vmem_to_hbm [thread:$0]  %s411_s21, 256, %s739_s3, [#allocation4], %s564_s0, %s564_s0, %s565_s15  }
 0x135   :  { %559 = dma.done.wait [#allocation4], 256  }
 0x136   :  { %560 = vsyncadd [#allocation4], 4294967040 }
 0x137   :  { %420 = vsyncpa [#allocation3], 1 }
 0x138   :  { %421 = vsyncpa [#allocation6], 1 }
 0x139   :  { %422 = vsyncpa [#allocation4], 1 }

</bundles_post_ra>
